<compile_context>
chip_gen: v5e
topology: v5e:2x2
jax: 0.10.0
libtpu: 0.0.40
codegen_flags: <defaults>
</compile_context>

<pallas_src>
import math

import jax
import jax.numpy as jnp
from jax.experimental import pallas as pl
from jax.experimental.pallas import tpu as pltpu

EPS = 1e-12
HALF_LOG_2PI = 0.5 * math.log(2.0 * math.pi)


def _make_normal_leaf_kernel(T: int, VC: int):
    def kernel(x_ref, mu_ref, sig_ref, marg_ref, z_ref):
        # x_ref:    (TB, VC)      inputs pre-repeated over channels
        # mu_ref:   (T, VC)       per-track means, lane-dense
        # sig_ref:  (T, VC)       per-track "sig" parameter (pre-clamp)
        # marg_ref: (1, VC)       int32 mask (nonzero -> marginalized -> 0)
        # z_ref:    (TB, T*VC)    output block, lane-dense
        x = x_ref[...]                                   # (TB, VC)
        marg = marg_ref[...] != 0                        # (1, VC)

        # Hoisted parameter math on the tiny (T, VC) tile: divide / log are
        # off the per-batch-element hot path.
        mu_all = mu_ref[...]                             # (T, VC)
        var_all = jnp.maximum(sig_ref[...], EPS)         # clamp(sig, eps)
        a_all = -0.5 / var_all                           # -1 / (2 var)
        b_all = -0.5 * jnp.log(var_all) - HALF_LOG_2PI   # normalizer

        for t in range(T):                               # static unroll, T is small
            diff = x - mu_all[t:t + 1, :]                # (TB, VC), sublane bcast
            logp = diff * diff * a_all[t:t + 1, :] + b_all[t:t + 1, :]
            z_ref[:, t * VC:(t + 1) * VC] = jnp.where(
                marg, 0.0, logp).astype(z_ref.dtype)

    return kernel


def normal_leaf_forward(x, mu, sig, marginalize, *, max_batch_block=512):
    """x: (B, V); mu, sig: (T, V, C); marginalize: (V,) bool.
    Returns z: (B, T, V, C) float32 = log N(x | mu, sqrt(clamp(sig, eps))),
    zeroed at marginalized variables."""
    B, V = x.shape
    T, V2, C = mu.shape
    assert V == V2
    VC = V * C

    # Wrapper-side layout plumbing (free / amortized over T tracks).
    x_exp = jnp.repeat(x.astype(jnp.float32), C, axis=-1)                # (B, VC)
    mu_f = mu.astype(jnp.float32).reshape(T, VC)                          # (T, VC)
    sig_f = sig.astype(jnp.float32).reshape(T, VC)                        # (T, VC)
    marg_i = jnp.repeat(marginalize.astype(jnp.int32), C).reshape(1, VC)  # (1, VC)

    # Batch tile: full B if small, else a multiple of 8 sized so the
    # double-buffered output block stays well within VMEM (v7x-safe).
    if B <= max_batch_block:
        TB = B
    else:
        budget_rows = max(8, (4 * 1024 * 1024) // (T * VC * 4))
        TB = min(max_batch_block, (budget_rows // 8) * 8)
    NB = pl.cdiv(B, TB)

    kernel = _make_normal_leaf_kernel(T, VC)

    z_flat = pl.pallas_call(
        kernel,
        out_shape=jax.ShapeDtypeStruct((B, T * VC), jnp.float32),
        grid_spec=pl.GridSpec(
            grid=(NB,),
            in_specs=[
                pl.BlockSpec((TB, VC), lambda b: (b, 0)),   # x (per batch tile)
                pl.BlockSpec((T, VC), lambda b: (0, 0)),    # mu (VMEM-resident)
                pl.BlockSpec((T, VC), lambda b: (0, 0)),    # sig (VMEM-resident)
                pl.BlockSpec((1, VC), lambda b: (0, 0)),    # marginalize mask
            ],
            out_specs=pl.BlockSpec((TB, T * VC), lambda b: (b, 0)),
        ),
        compiler_params=pltpu.CompilerParams(
            dimension_semantics=("parallel",)),
    )(x_exp, mu_f, sig_f, marg_i)

    return z_flat.reshape(B, T, V, C)


def normal_leaf_reference(x, mu, sig, marginalize):
    var = jnp.maximum(sig, EPS)
    logp = (-0.5 * (x[:, None, :, None] - mu[None]) ** 2 / var[None]
            - 0.5 * jnp.log(var[None]) - HALF_LOG_2PI)
    return jnp.where(marginalize[None, None, :, None], 0.0, logp)


# TODO(synk): em_batch / em_update / sample / mean / var are EM-training and
# sampling utilities operating on z.grad; they are not part of the forward
# pass and are not translated here.

if __name__ == "__main__":
    # Small shapes consistent with NormalLeaf(tracks=T, variables=V, channels=C)
    B, T, V, C = 2, 3, 16, 8

    key = jax.random.PRNGKey(0)
    k_x, k_mu = jax.random.split(key)

    # Deterministic parameter init mirroring __init__:
    #   mu = randn(T, V, C);  sig = 0.1 * ones(T, V, C)
    mu = jax.random.normal(k_mu, (T, V, C), dtype=jnp.float32)
    sig = jnp.ones((T, V, C), dtype=jnp.float32) * 0.1

    # Input x: (batch, variables)
    x = jax.random.normal(k_x, (B, V), dtype=jnp.float32)

    # Marginalize a couple of variables to exercise the masked path.
    marginalize = jnp.zeros((V,), dtype=bool).at[jnp.array([3, 7])].set(True)

    z = normal_leaf_forward(x, mu, sig, marginalize)
    z = jax.block_until_ready(z)

    z_ref = normal_leaf_reference(x, mu, sig, marginalize)
    assert z.shape == (B, T, V, C)
    assert jnp.allclose(z, z_ref, atol=1e-5, rtol=1e-5)

    print("KERNEL_OK")
</pallas_src>

<mosaic_0001>
module attributes {stable_mosaic.version = 11 : i64} {
  func.func @kernel(%arg0: i32, %arg1: memref<2x128xf32, #tpu.memory_space<vmem>>, %arg2: memref<3x128xf32, #tpu.memory_space<vmem>>, %arg3: memref<3x128xf32, #tpu.memory_space<vmem>>, %arg4: memref<1x128xi32, #tpu.memory_space<vmem>>, %arg5: memref<2x384xf32, #tpu.memory_space<vmem>>) attributes {dimension_semantics = [#tpu.dimension_semantics<parallel>], iteration_bounds = array<i64: 1>, scalar_prefetch = 0 : i64, scratch_operands = 0 : i64, tpu.core_type = #tpu.core_type<tc>, window_params = [{transform_indices = @transform_0, window_bounds = array<i64: 2, 128>}, {pipeline_mode = #tpu.pipeline_mode<synchronous>, transform_indices = @transform_1, window_bounds = array<i64: 3, 128>}, {pipeline_mode = #tpu.pipeline_mode<synchronous>, transform_indices = @transform_2, window_bounds = array<i64: 3, 128>}, {pipeline_mode = #tpu.pipeline_mode<synchronous>, transform_indices = @transform_3, window_bounds = array<i64: 1, 128>}, {transform_indices = @transform_4, window_bounds = array<i64: 2, 384>}]} {
    %c0 = arith.constant 0 : index
    %c0_0 = arith.constant 0 : index
    %0 = vector.load %arg1[%c0, %c0_0] : memref<2x128xf32, #tpu.memory_space<vmem>>, vector<2x128xf32>
    %c0_1 = arith.constant 0 : index
    %c0_2 = arith.constant 0 : index
    %1 = vector.load %arg4[%c0_1, %c0_2] : memref<1x128xi32, #tpu.memory_space<vmem>>, vector<1x128xi32>
    %c0_i32 = arith.constant 0 : i32
    %2 = vector.broadcast %c0_i32 : i32 to vector<1x128xi32>
    %3 = arith.cmpi ne, %1, %2 : vector<1x128xi32>
    %c0_3 = arith.constant 0 : index
    %c0_4 = arith.constant 0 : index
    %4 = vector.load %arg2[%c0_3, %c0_4] : memref<3x128xf32, #tpu.memory_space<vmem>>, vector<3x128xf32>
    %c0_5 = arith.constant 0 : index
    %c0_6 = arith.constant 0 : index
    %5 = vector.load %arg3[%c0_5, %c0_6] : memref<3x128xf32, #tpu.memory_space<vmem>>, vector<3x128xf32>
    %cst = arith.constant 9.99999996E-13 : f32
    %6 = vector.broadcast %cst : f32 to vector<3x128xf32>
    %7 = arith.maximumf %5, %6 : vector<3x128xf32>
    %cst_7 = arith.constant -5.000000e-01 : f32
    %8 = vector.broadcast %cst_7 : f32 to vector<3x128xf32>
    %9 = arith.divf %8, %7 : vector<3x128xf32>
    %10 = math.log %7 : vector<3x128xf32>
    %cst_8 = arith.constant -5.000000e-01 : f32
    %11 = vector.broadcast %cst_8 : f32 to vector<3x128xf32>
    %12 = arith.mulf %11, %10 : vector<3x128xf32>
    %cst_9 = arith.constant 0.918938517 : f32
    %13 = vector.broadcast %cst_9 : f32 to vector<3x128xf32>
    %14 = arith.subf %12, %13 : vector<3x128xf32>
    %15 = vector.extract_strided_slice %4 {offsets = [0, 0], sizes = [1, 128], strides = [1, 1]} : vector<3x128xf32> to vector<1x128xf32>
    %16 = vector.broadcast %15 : vector<1x128xf32> to vector<2x128xf32>
    %17 = arith.subf %0, %16 : vector<2x128xf32>
    %18 = arith.mulf %17, %17 : vector<2x128xf32>
    %19 = vector.extract_strided_slice %9 {offsets = [0, 0], sizes = [1, 128], strides = [1, 1]} : vector<3x128xf32> to vector<1x128xf32>
    %20 = vector.broadcast %19 : vector<1x128xf32> to vector<2x128xf32>
    %21 = arith.mulf %18, %20 : vector<2x128xf32>
    %22 = vector.extract_strided_slice %14 {offsets = [0, 0], sizes = [1, 128], strides = [1, 1]} : vector<3x128xf32> to vector<1x128xf32>
    %23 = vector.broadcast %22 : vector<1x128xf32> to vector<2x128xf32>
    %24 = arith.addf %21, %23 : vector<2x128xf32>
    %cst_10 = arith.constant 0.000000e+00 : f32
    %25 = vector.shape_cast %3 : vector<1x128xi1> to vector<1x128xi1>
    %26 = vector.broadcast %25 : vector<1x128xi1> to vector<2x128xi1>
    %27 = vector.broadcast %cst_10 : f32 to vector<2x128xf32>
    %28 = arith.select %26, %27, %24 : vector<2x128xi1>, vector<2x128xf32>
    %c0_11 = arith.constant 0 : index
    %c0_12 = arith.constant 0 : index
    %29 = vector.load %arg5[%c0_11, %c0_12] : memref<2x384xf32, #tpu.memory_space<vmem>>, vector<2x128xf32>
    tpu.vector_store %arg5[%c0_11, %c0_12], %28 {strides = array<i32>} : memref<2x384xf32, #tpu.memory_space<vmem>>, vector<2x128xf32>,
    %30 = vector.extract_strided_slice %4 {offsets = [1, 0], sizes = [1, 128], strides = [1, 1]} : vector<3x128xf32> to vector<1x128xf32>
    %31 = vector.broadcast %30 : vector<1x128xf32> to vector<2x128xf32>
    %32 = arith.subf %0, %31 : vector<2x128xf32>
    %33 = arith.mulf %32, %32 : vector<2x128xf32>
    %34 = vector.extract_strided_slice %9 {offsets = [1, 0], sizes = [1, 128], strides = [1, 1]} : vector<3x128xf32> to vector<1x128xf32>
    %35 = vector.broadcast %34 : vector<1x128xf32> to vector<2x128xf32>
    %36 = arith.mulf %33, %35 : vector<2x128xf32>
    %37 = vector.extract_strided_slice %14 {offsets = [1, 0], sizes = [1, 128], strides = [1, 1]} : vector<3x128xf32> to vector<1x128xf32>
    %38 = vector.broadcast %37 : vector<1x128xf32> to vector<2x128xf32>
    %39 = arith.addf %36, %38 : vector<2x128xf32>
    %cst_13 = arith.constant 0.000000e+00 : f32
    %40 = vector.shape_cast %3 : vector<1x128xi1> to vector<1x128xi1>
    %41 = vector.broadcast %40 : vector<1x128xi1> to vector<2x128xi1>
    %42 = vector.broadcast %cst_13 : f32 to vector<2x128xf32>
    %43 = arith.select %41, %42, %39 : vector<2x128xi1>, vector<2x128xf32>
    %c0_14 = arith.constant 0 : index
    %c128 = arith.constant 128 : index
    %44 = vector.load %arg5[%c0_14, %c128] : memref<2x384xf32, #tpu.memory_space<vmem>>, vector<2x128xf32>
    tpu.vector_store %arg5[%c0_14, %c128], %43 {strides = array<i32>} : memref<2x384xf32, #tpu.memory_space<vmem>>, vector<2x128xf32>,
    %45 = vector.extract_strided_slice %4 {offsets = [2, 0], sizes = [1, 128], strides = [1, 1]} : vector<3x128xf32> to vector<1x128xf32>
    %46 = vector.broadcast %45 : vector<1x128xf32> to vector<2x128xf32>
    %47 = arith.subf %0, %46 : vector<2x128xf32>
    %48 = arith.mulf %47, %47 : vector<2x128xf32>
    %49 = vector.extract_strided_slice %9 {offsets = [2, 0], sizes = [1, 128], strides = [1, 1]} : vector<3x128xf32> to vector<1x128xf32>
    %50 = vector.broadcast %49 : vector<1x128xf32> to vector<2x128xf32>
    %51 = arith.mulf %48, %50 : vector<2x128xf32>
    %52 = vector.extract_strided_slice %14 {offsets = [2, 0], sizes = [1, 128], strides = [1, 1]} : vector<3x128xf32> to vector<1x128xf32>
    %53 = vector.broadcast %52 : vector<1x128xf32> to vector<2x128xf32>
    %54 = arith.addf %51, %53 : vector<2x128xf32>
    %cst_15 = arith.constant 0.000000e+00 : f32
    %55 = vector.shape_cast %3 : vector<1x128xi1> to vector<1x128xi1>
    %56 = vector.broadcast %55 : vector<1x128xi1> to vector<2x128xi1>
    %57 = vector.broadcast %cst_15 : f32 to vector<2x128xf32>
    %58 = arith.select %56, %57, %54 : vector<2x128xi1>, vector<2x128xf32>
    %c0_16 = arith.constant 0 : index
    %c256 = arith.constant 256 : index
    %59 = vector.load %arg5[%c0_16, %c256] : memref<2x384xf32, #tpu.memory_space<vmem>>, vector<2x128xf32>
    tpu.vector_store %arg5[%c0_16, %c256], %58 {strides = array<i32>} : memref<2x384xf32, #tpu.memory_space<vmem>>, vector<2x128xf32>,
    return
  }
  func.func @transform_0(%arg0: i32) -> (i32, i32) {
    %c0_i32 = arith.constant 0 : i32
    %c0_i32_0 = arith.constant 0 : i32
    return %arg0, %c0_i32 : i32, i32
  }
  func.func @transform_1(%arg0: i32) -> (i32, i32) {
    %c0_i32 = arith.constant 0 : i32
    %c0_i32_0 = arith.constant 0 : i32
    %c0_i32_1 = arith.constant 0 : i32
    return %c0_i32, %c0_i32_0 : i32, i32
  }
  func.func @transform_2(%arg0: i32) -> (i32, i32) {
    %c0_i32 = arith.constant 0 : i32
    %c0_i32_0 = arith.constant 0 : i32
    %c0_i32_1 = arith.constant 0 : i32
    return %c0_i32, %c0_i32_0 : i32, i32
  }
  func.func @transform_3(%arg0: i32) -> (i32, i32) {
    %c0_i32 = arith.constant 0 : i32
    %c0_i32_0 = arith.constant 0 : i32
    %c0_i32_1 = arith.constant 0 : i32
    return %c0_i32, %c0_i32_0 : i32, i32
  }
  func.func @transform_4(%arg0: i32) -> (i32, i32) {
    %c0_i32 = arith.constant 0 : i32
    %c0_i32_0 = arith.constant 0 : i32
    return %arg0, %c0_i32 : i32, i32
  }
}

</mosaic_0001>

<bundles_post_ra>
// kernel: tpu_custom_call.1
= control target key start
LH: loop header
LB: loop body
LE: loop exit
PB: predicated region body
PF: predicated region fallthrough
CT: control target
= control target key end

     0   :  { %9 = vsyncpa [#allocation3], 0  ;;  %s289_s0 = inlined_call_operand.hbm [shape: f32[2,128], index: 0, kind: input, shape index: {}]   ;;  %s290_s1 = inlined_call_operand.hbm [shape: f32[3,128], index: 1, kind: input, shape index: {}]   ;;  %s291_s2 = inlined_call_operand.hbm [shape: f32[3,128], index: 2, kind: input, shape index: {}]   ;;  %s292_s3 = inlined_call_operand.vmem [shape: s32[1,128], index: 3, kind: input, shape index: {}]   ;;  %s293_s4 = inlined_call_operand.hbm [shape: f32[2,384], index: 4, kind: output, shape index: {}]  }
   0x1   :  { %10 = vsyncpa [#allocation6], 0  ;;  %s28_s17 = sshll.u32 %s290_s1, 4  ;;  %s29_s17 = int_to_ptr.hbm [resolvable:$true] %s28_s17 }
   0x2   :  { %11 = vsyncpa [#allocation4], 0  ;;  %s244_s18 = smov [#allocation5]   ;;  %s17_s22 = sshll.u32 %s289_s0, 4  ;;  %s18_s22 = int_to_ptr.hbm [resolvable:$true] %s17_s22 }
   0x3   :  { %s30_s19 = sshll.u32 %s244_s18, 4  ;;  %s245_s23 = smov [#allocation2]   ;;  %s31_s19 = int_to_ptr.vmem [resolvable:$true] %s30_s19 }
   0x4   :  { %33 = dma.hbm_to_vmem [thread:$0]  %s29_s17, 64, %s31_s19, [#allocation6]  }
   0x5   :  { %s19_s24 = sshll.u32 %s245_s23, 4  ;;  %s39_s27 = sshll.u32 %s291_s2, 4  ;;  %s20_s24 = int_to_ptr.vmem [resolvable:$true] %s19_s24  ;;  %s40_s27 = int_to_ptr.hbm [resolvable:$true] %s39_s27 }
   0x6   :  { %22 = dma.hbm_to_vmem [thread:$0]  %s18_s22, 32, %s20_s24, [#allocation3]  }
   0x7   :  { %s246_s1 = smov [#allocation7]  }
   0x8   :  { %s41_s28 = sshll.u32 %s246_s1, 4  ;;  %s42_s28 = int_to_ptr.vmem [resolvable:$true] %s41_s28 }
   0x9   :  { %44 = dma.hbm_to_vmem [thread:$0]  %s40_s27, 64, %s42_s28, [#allocation6]  }
   0xa   :  { %238 = dma.done.wait [#allocation3], 32  }
   0xb   :  { %239 = vsyncadd [#allocation3], 4294967264 }
   0xc   :  { %240 = dma.done.wait [#allocation6], 128  }
   0xd   :  { %241 = vsyncadd [#allocation6], 4294967168  ;;  %v63_v0 = vld [vmem:[#allocation7] sm:$0x7]  ;;  %v62_v2 = vld [vmem:[#allocation5] sm:$0x7] }
   0xe   :  { %v64_v1 = vmax.f32 %v63_v0, 1e-12  ;;  %v59_v5 = vld [vmem:[#allocation2] sm:$0x3]  ;;  %v84_v7 = vperm.slane %v62_v2, 0  ;;  %v96_v10 = vperm.slane %v62_v2, 1 }
   0xf   :  { %v105_v11 = vperm.slane %v62_v2, 2  ;;  %v60_v12 = vld [vmem:[%s292_s3] sm:$0x1]  ;;  %v247_v24 = vmov 0   ;;  %s248_s3 = smov [#allocation8]   ;;  %s121_s6 = sshll.u32 %s293_s4, 4  ;;  %s122_s6 = int_to_ptr.hbm [resolvable:$true] %s121_s6 }
  0x10   :  { %138 = vrcp.f32 %v64_v1  ;;  %v76_v8 = vand.u32 2147483648, %v64_v1  ;;  %vm70_vm0 = vweird.f32 %v64_v1  ;;  %v74_v14 = vand.u32 2147483647, %v64_v1  ;;  %s119_s29 = sshll.u32 %s248_s3, 4  ;;  %s120_s29 = int_to_ptr.vmem [resolvable:$true] %s119_s29 }
  0x11   :  { %140 = vlog2.f32 %v64_v1  ;;  %vm61_vm2 = vcmp.ne.s32.totalorder %v60_v12, 0  ;;  %v85_v18 = vsub.f32 %v59_v5, %v84_v7  ;;  %v97_v20 = vsub.f32 %v59_v5, %v96_v10 }
  0x12   :  { %v77_v17 = vor.u32 1.1754944e-38, %v76_v8  ;;  %vm75_vm4 = vcmp.eq.f32.partialorder %v74_v14, 8.507059e+37  ;;  %v106_v21 = vsub.f32 %v59_v5, %v105_v11  ;;  %v91_v25 = vsel %vm61_vm2, 1, %v247_v24 }
  0x13   :  { %v86_v28 = vmul.f32 %v85_v18, %v85_v18  ;;  %v98_v29 = vmul.f32 %v97_v20, %v97_v20  ;;  %v92_v32 = vperm.slane %v91_v25, 0 }
  0x14   :  { %v107_v30 = vmul.f32 %v106_v21, %v106_v21 }
  0x15   :  { %vm93_vm5 = vcmp.eq.s32.totalorder %v92_v32, 1 }
  0x16   :  { %v139_v3 = vpop.eup %138 }
  0x17   :  { %v141_v4 = vpop.eup %140  ;;  %v66_v6 = vmul.f32 %v139_v3, %v64_v1  ;;  %vm71_vm1 = vweird.f32 %v139_v3 }
  0x18   :  { %v81_v9 = vmul.f32 0.6931472, %v141_v4  ;;  %vm72_vm3 = vmor %vm70_vm0, %vm71_vm1 }
  0x19   :  { %v67_v13 = vsub.f32 1.0, %v66_v6 }
  0x1a   :  { %v82_v15 = vmul.f32 -0.5, %v81_v9 }
  0x1b   :  { %v68_v16 = vmul.f32 %v139_v3, %v67_v13 }
  0x1c   :  { %v132_v22 = vadd.f32 -0.9189385, %v82_v15 }
  0x1d   :  { %v69_v19 = vadd.f32 %v139_v3, %v68_v16 }
  0x1e   :  { %v89_v31 = vperm.slane %v132_v22, 0  ;;  %v101_v33 = vperm.slane %v132_v22, 1  ;;  %v110_v37 = vperm.slane %v132_v22, 2 }
  0x1f   :  { %v73_v23 = vsel %vm72_vm3, %v139_v3, %v69_v19 }
  0x20   :  { %v78_v26 = vsel %vm75_vm4, %v77_v17, %v73_v23 }
  0x21   :  { %v79_v27 = vmul.f32 -0.5, %v78_v26 }
  0x23   :  { %v87_v34 = vperm.slane %v79_v27, 0  ;;  %v99_v35 = vperm.slane %v79_v27, 1  ;;  %v108_v36 = vperm.slane %v79_v27, 2 }
  0x25   :  { %v88_v38 = vmul.f32 %v87_v34, %v86_v28  ;;  %v100_v39 = vmul.f32 %v99_v35, %v98_v29  ;;  %v109_v40 = vmul.f32 %v108_v36, %v107_v30 }
  0x27   :  { %v90_v41 = vadd.f32 %v89_v31, %v88_v38  ;;  %v102_v42 = vadd.f32 %v101_v33, %v100_v39  ;;  %v111_v43 = vadd.f32 %v110_v37, %v109_v40 }
  0x29   :  { %v94_v44 = vsel %vm93_vm5, 0.0, %v90_v41  ;;  %v103_v45 = vsel %vm93_vm5, 0.0, %v102_v42  ;;  %v112_v46 = vsel %vm93_vm5, 0.0, %v111_v43 }
  0x2a   :  { %95 = vst [vmem:[#allocation8] sm:$0x3] %v94_v44 }
  0x2b   :  { %104 = vst [vmem:[#allocation8 + $0x2] sm:$0x3] %v103_v45 }
  0x2c   :  { %113 = vst [vmem:[#allocation8 + $0x4] sm:$0x3] %v112_v46 }
  0x2d   :  { %124 = dma.vmem_to_hbm [thread:$0]  %s120_s29, 96, %s122_s6, [#allocation4]  }
  0x2e   :  { %242 = dma.done.wait [#allocation4], 96  }
  0x2f   :  { %243 = vsyncadd [#allocation4], 4294967200 }
  0x30   :  { %129 = vsyncpa [#allocation3], 1 }
  0x31   :  { %130 = vsyncpa [#allocation6], 1 }
  0x32   :  { %131 = vsyncpa [#allocation4], 1 }

</bundles_post_ra>
